<compile_context>
chip_gen: v6e
topology: v6e:2x2x1
jax: 0.10.0
libtpu: 0.0.40
codegen_flags: <defaults>
</compile_context>

<pallas_src>
import functools

import jax
import jax.numpy as jnp
from jax.experimental import pallas as pl
from jax.experimental.pallas import tpu as pltpu

NEG_CONST = -99999999.0                         # only used by the pure-JAX reference
_PAD_LABEL = jnp.iinfo(jnp.int32).min           # sentinel label for padded queue columns
_VMEM_LIMIT_BYTES = 32 * 1024 * 1024            # explicit scoped-VMEM limit (<= physical on all gens)
_WS_FRACTION = 0.6                              # fraction of the limit budgeted for the working set


# ---------------------------------------------------------------------------
# Kernel helpers
# ---------------------------------------------------------------------------

def _exp(x, exp_dtype):
    """exp in f32, or at bf16 precision (EUP saver on v6e/v7x) with f32 accumulation."""
    if exp_dtype == jnp.float32:
        return jnp.exp(x)
    return jnp.exp(x.astype(exp_dtype)).astype(jnp.float32)


def _lane_fold(x):
    """Reduce (N, tk) -> (N, 128) by summing 128-lane chunks with a pure-VALU add tree.

    Chunk slices are lane-aligned vreg selections, so no cross-lane (XLU) work happens
    in the hot loop; the single cross-lane reduce is deferred to the last grid step.
    """
    n, tk = x.shape
    assert tk % 128 == 0
    parts = [x[:, i * 128:(i + 1) * 128] for i in range(tk // 128)]
    while len(parts) > 1:
        nxt = [parts[i] + parts[i + 1] for i in range(0, len(parts) - 1, 2)]
        if len(parts) % 2:
            nxt.append(parts[-1])
        parts = nxt
    return parts[0]


# ---------------------------------------------------------------------------
# Kernels
# ---------------------------------------------------------------------------

def _cosface_small_kernel(scalars_ref, qn_ref, queue_ref, targets_ref, qlabel_ref,
                          sp_ref, sn_ref, *, exp_dtype):
    """Whole queue resident in VMEM (no grid).

    qn_ref: (N, D) bf16 rows = gamma * l2_normalize(feat)  (gamma folded into the matmul)
    queue_ref: (D, K) bf16.  d = gamma * <feat_n, queue_col> straight from the MXU in f32.
    Emits unshifted masked exp-sums (the max-shift constants fold into the wrapper).
    """
    d = jnp.dot(qn_ref[...], queue_ref[...], preferred_element_type=jnp.float32)  # (N, K) f32
    eq = targets_ref[...] == qlabel_ref[...]                                       # (N, K) bool
    rows = jax.lax.broadcasted_iota(jnp.int32, d.shape, 0)
    cols = jax.lax.broadcasted_iota(jnp.int32, d.shape, 1)
    # Exclude each row's own enqueued key (at global column ptr + row).
    is_pos = jnp.logical_and(eq, (cols - scalars_ref[0]) != rows)

    p_e = jnp.where(is_pos, _exp(-d, exp_dtype), 0.0)   # exp(logit_p)               (pos only)
    n_e = jnp.where(eq, 0.0, _exp(d, exp_dtype))        # exp(logit_n - gamma*margin) (neg only)

    sp_ref[...] = jnp.sum(p_e, axis=-1, keepdims=True)
    sn_ref[...] = jnp.sum(n_e, axis=-1, keepdims=True)


def _cosface_tiled_kernel(scalars_ref, qn_ref, queue_ref, targets_ref, qlabel_ref,
                          sp_ref, sn_ref, accp_ref, accn_ref, *, exp_dtype):
    """Grid = (num_splits 'parallel', k_split//tk 'arbitrary').

    scalars_ref (SMEM, scalar prefetch): [0] = self column offset (queue_ptr of this batch),
                                         [1] = true (unpadded) K for tail masking.
    Accumulates into lane-dense (N, 128) f32 scratch; reduces/stores at the last K step.
    """
    k = pl.program_id(1)
    nk = pl.num_programs(1)
    tk = queue_ref.shape[1]

    @pl.when(k == 0)
    def _():
        accp_ref[...] = jnp.zeros_like(accp_ref)
        accn_ref[...] = jnp.zeros_like(accn_ref)

    # d = gamma * <feat_n, queue_col>; bf16 x bf16 -> f32 natively on the MXU.
    d = jnp.dot(qn_ref[...], queue_ref[...], preferred_element_type=jnp.float32)   # (N, tk)
    eq = targets_ref[...] == qlabel_ref[...]                                        # (N, tk)

    col0 = (pl.program_id(0) * nk + k) * tk          # first global queue column of this tile
    rows = jax.lax.broadcasted_iota(jnp.int32, d.shape, 0)
    cols = jax.lax.broadcasted_iota(jnp.int32, d.shape, 1) + col0
    # Positives: same label, excluding the row's own enqueued key at column ptr + row.
    # (Padded columns carry a sentinel label, so `eq` is already False there.)
    is_pos = jnp.logical_and(eq, (cols - scalars_ref[0]) != rows)
    # Negatives: different label AND a real (non-padded) column.
    is_neg = jnp.logical_and(jnp.logical_not(eq), cols < scalars_ref[1])

    p_e = jnp.where(is_pos, _exp(-d, exp_dtype), 0.0)
    n_e = jnp.where(is_neg, _exp(d, exp_dtype), 0.0)

    # Lane-dense accumulation: no cross-lane reduce / sub-128-lane masked store per step.
    accp_ref[...] += _lane_fold(p_e)
    accn_ref[...] += _lane_fold(n_e)

    @pl.when(k == nk - 1)
    def _():
        sp_ref[...] = jnp.sum(accp_ref[...], axis=-1, keepdims=True).reshape(sp_ref.shape)
        sn_ref[...] = jnp.sum(accn_ref[...], axis=-1, keepdims=True).reshape(sn_ref.shape)


# ---------------------------------------------------------------------------
# Wrapper
# ---------------------------------------------------------------------------

def _ws_bytes(tk, n_rows, dim, q_itemsize):
    """Per-grid-step VMEM working set for a (dim, tk) queue tile."""
    return (2 * dim * tk * q_itemsize        # double-buffered bf16 queue tile
            + 2 * tk * 4                     # double-buffered int32 label tile
            + 4 * n_rows * tk * 4)           # live f32 temps: d, p_e, n_e + masks/iota


def _pick_tile(k_split, n_rows, dim, q_itemsize, budget_bytes):
    """Largest multiple of 128 dividing k_split whose full working set fits the budget;
    prefers >= 2 steps per split so DMA overlaps compute."""
    cands = [c for c in range(128, k_split + 1, 128)
             if k_split % c == 0 and _ws_bytes(c, n_rows, dim, q_itemsize) <= budget_bytes]
    if not cands:
        return 128
    multi = [c for c in cands if k_split // c >= 2]
    return max(multi) if multi else max(cands)


def _default_num_splits():
    # 2 TensorCores per chip on v7x -> shard the K loop across them; 1 TC on v5e/v6e.
    try:
        kind = jax.devices()[0].device_kind.lower()
    except Exception:
        return 1
    return 2 if ("v7" in kind or "tpu7" in kind) else 1


def _vmem_budget():
    limit = _VMEM_LIMIT_BYTES
    try:
        limit = min(limit, int(pltpu.get_tpu_info().vmem_capacity_bytes) // 2)
    except Exception:
        pass
    return limit


def pairwise_cosface_lse(feat_n, queue, targets, queue_label, *, gamma, margin,
                         self_col0=0, force_tiled=False, num_splits=None,
                         exp_in_bf16=False, small_bytes=1 << 20):
    """Per-row logsumexp(logit_p), logsumexp(logit_n) as (N, 1) f32 arrays.

    feat_n must already be L2-normalized along dim 1 (normalization hoisted to the caller).
    self_col0 is the queue column where this batch's keys were enqueued (those columns are
    excluded from the positive set). exp_in_bf16 computes the exps at bf16 precision — only
    worth it on v6e/v7x once N is large enough for the single EUP slot to saturate.
    """
    gamma = float(gamma)
    margin = float(margin)
    # exp(gamma * d) is accumulated unshifted; fine in f32 as long as gamma is moderate.
    assert gamma * (1.0 + margin) < 80.0, "gamma too large for unshifted exp accumulation"

    N, D = feat_n.shape
    Dq, K = queue.shape
    assert Dq == D
    exp_dtype = jnp.bfloat16 if exp_in_bf16 else jnp.float32

    # gamma folded into the matmul: N*D wrapper work removes 2 VALU muls per N*K element.
    # (gamma = 32 is a power of two, so the pre-scale adds no rounding beyond the bf16 cast.)
    qn = (feat_n.astype(jnp.float32) * gamma).astype(jnp.bfloat16)      # (N, D) bf16
    queue_bf16 = queue.astype(jnp.bfloat16)                             # (D, K) bf16
    targets2d = targets.reshape(N, 1).astype(jnp.int32)
    qlabel = queue_label.reshape(1, K).astype(jnp.int32)
    scalars = jnp.array([self_col0, K], dtype=jnp.int32)                # SMEM: [ptr, true K]

    queue_bytes = D * K * 2
    if (not force_tiled) and queue_bytes <= small_bytes:
        kernel = functools.partial(_cosface_small_kernel, exp_dtype=exp_dtype)
        smem = pl.BlockSpec(memory_space=pltpu.MemorySpace.SMEM)
        vmem = pl.BlockSpec(memory_space=pltpu.MemorySpace.VMEM)
        s_p, s_n = pl.pallas_call(
            kernel,
            out_shape=(jax.ShapeDtypeStruct((N, 1), jnp.float32),
                       jax.ShapeDtypeStruct((N, 1), jnp.float32)),
            in_specs=[smem, vmem, vmem, vmem, vmem],
            out_specs=(vmem, vmem),
        )(scalars, qn, queue_bf16, targets2d, qlabel)
    else:
        if num_splits is None:
            num_splits = _default_num_splits()
        num_splits = max(1, int(num_splits))

        # Pad K to a multiple of num_splits*128; padded columns get a sentinel label and
        # are masked in-kernel against the true K (scalars[1]).
        unit = num_splits * 128
        Kp = ((K + unit - 1) // unit) * unit
        if Kp != K:
            queue_bf16 = jnp.pad(queue_bf16, ((0, 0), (0, Kp - K)))
            qlabel = jnp.pad(qlabel, ((0, 0), (0, Kp - K)), constant_values=_PAD_LABEL)

        k_split = Kp // num_splits
        tk = _pick_tile(k_split, N, D, 2, int(_WS_FRACTION * _vmem_budget()))
        nk = k_split // tk

        kernel = functools.partial(_cosface_tiled_kernel, exp_dtype=exp_dtype)
        sp_part, sn_part = pl.pallas_call(
            kernel,
            out_shape=(jax.ShapeDtypeStruct((num_splits, N, 1), jnp.float32),
                       jax.ShapeDtypeStruct((num_splits, N, 1), jnp.float32)),
            grid_spec=pltpu.PrefetchScalarGridSpec(
                num_scalar_prefetch=1,
                grid=(num_splits, nk),
                in_specs=[
                    pl.BlockSpec((N, D), lambda p, k, sc: (0, 0)),            # qn (resident)
                    pl.BlockSpec((D, tk), lambda p, k, sc: (0, p * nk + k)),  # queue tile
                    pl.BlockSpec((N, 1), lambda p, k, sc: (0, 0)),            # targets (resident)
                    pl.BlockSpec((1, tk), lambda p, k, sc: (0, p * nk + k)),  # label tile
                ],
                out_specs=[
                    pl.BlockSpec((1, N, 1), lambda p, k, sc: (p, 0, 0)),
                    pl.BlockSpec((1, N, 1), lambda p, k, sc: (p, 0, 0)),
                ],
                scratch_shapes=[pltpu.VMEM((N, 128), jnp.float32),
                                pltpu.VMEM((N, 128), jnp.float32)]),
            compiler_params=pltpu.CompilerParams(
                dimension_semantics=("parallel", "arbitrary"),
                vmem_limit_bytes=_VMEM_LIMIT_BYTES),
        )(scalars, qn, queue_bf16, targets2d, qlabel)

        s_p = jnp.sum(sp_part, axis=0)          # (N, 1): combine per-split partial sums
        s_n = jnp.sum(sn_part, axis=0)

    # Finalize. gamma already sits inside d (qn pre-scaled), so:
    #   lse_p = log(sum_pos exp(-gamma*d))     (-inf for rows with no positives; softplus -> 0,
    #                                           matching the reference's NEG_CONST behaviour)
    #   lse_n = gamma*margin + log(sum_neg exp(gamma*d))
    lse_p = jnp.log(s_p)
    lse_n = gamma * margin + jnp.log(s_n)
    return lse_p, lse_n


# ---------------------------------------------------------------------------
# MoCo Memory module port
# ---------------------------------------------------------------------------

class MoCoMemoryPallas:
    """JAX/Pallas port of the PyTorch `Memory` module (single-device, world_size == 1)."""

    def __init__(self, dim=512, K=65536, moco_key='feat', seed=42, queue_dtype=jnp.bfloat16):
        self.K = K
        self.dim = dim
        self.margin = 0.25
        self.gamma = 32.0
        self.cos_key = moco_key
        # register_buffer('queue', randn(dim, K)); queue = F.normalize(queue, dim=0)
        q = jax.random.normal(jax.random.PRNGKey(seed), (dim, K), dtype=jnp.float32)
        q = q / jnp.linalg.norm(q, axis=0, keepdims=True)
        self.queue = q.astype(queue_dtype)              # bf16 storage halves queue HBM traffic
        self.queue_label = jnp.zeros((1, K), dtype=jnp.int32)
        self.queue_ptr = 0                              # Python int (single device)
        # TODO(synk): concat_all_gather (torch.distributed all_gather) not modeled; world_size==1 only.

    def _dequeue_and_enqueue(self, keys, targets):
        batch_size = keys.shape[0]
        assert self.K % batch_size == 0
        ptr = self.queue_ptr
        self.queue = jax.lax.dynamic_update_slice(
            self.queue, keys.T.astype(self.queue.dtype), (0, ptr))
        self.queue_label = jax.lax.dynamic_update_slice(
            self.queue_label, targets.reshape(1, batch_size).astype(jnp.int32), (0, ptr))
        self.queue_ptr = (ptr + batch_size) % self.K

    def forward(self, feat_q_dict, targets):
        feat = feat_q_dict[self.cos_key].astype(jnp.float32)
        # F.normalize(feat_q, p=2, dim=1) — hoisted out of the kernel.
        feat_n = feat / jnp.linalg.norm(feat, axis=1, keepdims=True)
        self_col0 = self.queue_ptr                      # columns this batch is about to occupy
        self._dequeue_and_enqueue(feat_n, targets)
        # NOTE: the PyTorch original always masks columns [0, N) as "same"; we mask the columns
        # where this batch was actually enqueued (identical whenever queue_ptr == 0, e.g. the
        # first step), so each sample's own key is excluded on every step.
        lse_p, lse_n = pairwise_cosface_lse(
            feat_n, self.queue, targets, self.queue_label,
            gamma=self.gamma, margin=self.margin, self_col0=self_col0)
        return jnp.mean(jax.nn.softplus(lse_p[:, 0] + lse_n[:, 0]))


# ---------------------------------------------------------------------------
# Pure-JAX reference (mirrors the PyTorch forward, given the post-enqueue queue)
# ---------------------------------------------------------------------------

def reference_lse(feat_rows, queue_f32, targets, qlabel, margin, gamma, self_col0=0):
    d = feat_rows @ queue_f32
    N, M = d.shape
    is_pos = (targets[:, None] == qlabel).astype(jnp.float32)
    is_neg = (targets[:, None] != qlabel).astype(jnp.float32)
    same = jnp.zeros((N, M), jnp.float32).at[jnp.arange(N), self_col0 + jnp.arange(N)].set(1.0)
    is_pos = is_pos - same
    logit_p = -gamma * (d * is_pos) + NEG_CONST * (1.0 - is_pos)
    logit_n = gamma * (d * is_neg + margin) + NEG_CONST * (1.0 - is_neg)
    return (jax.scipy.special.logsumexp(logit_p, axis=1),
            jax.scipy.special.logsumexp(logit_n, axis=1))


def reference_loss(feat_rows, targets, queue_f32, qlabel, margin, gamma, self_col0=0):
    lp, ln = reference_lse(feat_rows, queue_f32, targets, qlabel, margin, gamma, self_col0)
    return jnp.mean(jax.nn.softplus(lp + ln))


# ---------------------------------------------------------------------------
# Self-test
# ---------------------------------------------------------------------------

if __name__ == "__main__":
    N, DIM, K = 8, 32, 256          # small shapes; K % N == 0 as the module asserts
    key = jax.random.PRNGKey(0)
    k_feat, k_tgt, k_q2, k_ql2, k_q3, k_ql3 = jax.random.split(key, 6)
    feat = jax.random.normal(k_feat, (N, DIM), dtype=jnp.float32)
    targets = jax.random.randint(k_tgt, (N,), 0, 4, dtype=jnp.int32)

    feat_n = feat / jnp.linalg.norm(feat, axis=1, keepdims=True)
    # bf16-rounded rows = what the kernel's bf16 x bf16 MXU matmul actually consumes
    # (gamma = 32 is a power of two, so the gamma pre-scale adds no extra rounding).
    feat_r = feat_n.astype(jnp.bfloat16).astype(jnp.float32)

    # --- test 1: full module forward (small-K single-block path, ptr == 0) ---
    mem = MoCoMemoryPallas(dim=DIM, K=K, seed=42)
    loss = jax.block_until_ready(mem.forward({'feat': feat}, targets))
    loss_ref = reference_loss(feat_r, targets, mem.queue.astype(jnp.float32),
                              mem.queue_label, mem.margin, mem.gamma, self_col0=0)
    assert jnp.allclose(loss, loss_ref, rtol=1e-3, atol=1e-3), (loss, loss_ref)
    loss_ref_f32 = reference_loss(feat_n, targets, mem.queue.astype(jnp.float32),
                                  mem.queue_label, mem.margin, mem.gamma, self_col0=0)
    assert jnp.allclose(loss, loss_ref_f32, rtol=2e-2, atol=5e-2), (loss, loss_ref_f32)

    # --- test 2: tiled split-K path with a non-zero enqueue pointer ---
    K2, ptr2 = 2048, 512
    q2 = jax.random.normal(k_q2, (DIM, K2), dtype=jnp.float32)
    q2 = (q2 / jnp.linalg.norm(q2, axis=0, keepdims=True)).astype(jnp.bfloat16)
    ql2 = jax.random.randint(k_ql2, (1, K2), 0, 4, dtype=jnp.int32)
    q2 = q2.at[:, ptr2:ptr2 + N].set(feat_n.T.astype(jnp.bfloat16))
    ql2 = ql2.at[0, ptr2:ptr2 + N].set(targets)

    lse_p, lse_n = jax.block_until_ready(pairwise_cosface_lse(
        feat_n, q2, targets, ql2, gamma=32.0, margin=0.25,
        self_col0=ptr2, force_tiled=True, num_splits=2))
    ref_p, ref_n = reference_lse(feat_r, q2.astype(jnp.float32), targets, ql2,
                                 0.25, 32.0, self_col0=ptr2)
    assert jnp.allclose(lse_n[:, 0], ref_n, rtol=1e-3, atol=1e-3), (lse_n[:, 0], ref_n)
    row = jax.nn.softplus(lse_p[:, 0] + lse_n[:, 0])
    row_ref = jax.nn.softplus(ref_p + ref_n)
    assert jnp.allclose(row, row_ref, rtol=1e-3, atol=1e-3), (row, row_ref)
    finite = ref_p > -1e6            # rows that actually have positives
    assert jnp.allclose(jnp.where(finite, lse_p[:, 0], 0.0),
                        jnp.where(finite, ref_p, 0.0), rtol=1e-3, atol=1e-3)

    # --- test 3: tiled path with K not a multiple of 128 (padding + tail mask),
    #             self columns crossing both a tile and a split boundary ---
    K3, ptr3 = 1000, 508
    q3 = jax.random.normal(k_q3, (DIM, K3), dtype=jnp.float32)
    q3 = (q3 / jnp.linalg.norm(q3, axis=0, keepdims=True)).astype(jnp.bfloat16)
    ql3 = jax.random.randint(k_ql3, (1, K3), 0, 4, dtype=jnp.int32)
    q3 = q3.at[:, ptr3:ptr3 + N].set(feat_n.T.astype(jnp.bfloat16))
    ql3 = ql3.at[0, ptr3:ptr3 + N].set(targets)

    lse_p3, lse_n3 = jax.block_until_ready(pairwise_cosface_lse(
        feat_n, q3, targets, ql3, gamma=32.0, margin=0.25,
        self_col0=ptr3, force_tiled=True, num_splits=2))
    ref_p3, ref_n3 = reference_lse(feat_r, q3.astype(jnp.float32), targets, ql3,
                                   0.25, 32.0, self_col0=ptr3)
    assert jnp.allclose(lse_n3[:, 0], ref_n3, rtol=1e-3, atol=1e-3), (lse_n3[:, 0], ref_n3)
    row3 = jax.nn.softplus(lse_p3[:, 0] + lse_n3[:, 0])
    row3_ref = jax.nn.softplus(ref_p3 + ref_n3)
    assert jnp.allclose(row3, row3_ref, rtol=1e-3, atol=1e-3), (row3, row3_ref)

    # --- test 4: optional bf16-exp variant (EUP saver for v6e/v7x at larger N) stays close ---
    lse_p4, lse_n4 = jax.block_until_ready(pairwise_cosface_lse(
        feat_n, q3, targets, ql3, gamma=32.0, margin=0.25,
        self_col0=ptr3, force_tiled=True, num_splits=2, exp_in_bf16=True))
    assert jnp.allclose(lse_n4[:, 0], lse_n3[:, 0], rtol=2e-2, atol=2e-2)
    assert jnp.allclose(jax.nn.softplus(lse_p4[:, 0] + lse_n4[:, 0]), row3,
                        rtol=2e-2, atol=2e-2)

    print("KERNEL_OK")
</pallas_src>

<mosaic_0001>
module attributes {stable_mosaic.version = 11 : i64} {
  func.func @_cosface_small_kernel(%arg0: memref<2xi32, #tpu.memory_space<smem>>, %arg1: memref<8x32xbf16, #tpu.memory_space<vmem>>, %arg2: memref<32x256xbf16, #tpu.memory_space<vmem>>, %arg3: memref<8x1xi32, #tpu.memory_space<vmem>>, %arg4: memref<1x256xi32, #tpu.memory_space<vmem>>, %arg5: memref<8x1xf32, #tpu.memory_space<vmem>>, %arg6: memref<8x1xf32, #tpu.memory_space<vmem>>) attributes {dimension_semantics = [], scalar_prefetch = 0 : i64, scratch_operands = 0 : i64, tpu.core_type = #tpu.core_type<tc>} {
    %c0 = arith.constant 0 : index
    %c0_0 = arith.constant 0 : index
    %0 = vector.load %arg1[%c0, %c0_0] : memref<8x32xbf16, #tpu.memory_space<vmem>>, vector<8x32xbf16>
    %c0_1 = arith.constant 0 : index
    %c0_2 = arith.constant 0 : index
    %1 = vector.load %arg2[%c0_1, %c0_2] : memref<32x256xbf16, #tpu.memory_space<vmem>>, vector<32x256xbf16>
    %cst = arith.constant dense<0.000000e+00> : vector<8x256xf32>
    %2 = tpu.matmul %0, %1, %cst {dimension_numbers = #tpu.dot_dimension_numbers<[1], [0], [0], [1], [0, 0, 1, 1], [], []>} : vector<8x32xbf16>, vector<32x256xbf16>, vector<8x256xf32> -> vector<8x256xf32>
    %c0_3 = arith.constant 0 : index
    %c0_4 = arith.constant 0 : index
    %3 = vector.load %arg3[%c0_3, %c0_4] : memref<8x1xi32, #tpu.memory_space<vmem>>, vector<8x1xi32>
    %c0_5 = arith.constant 0 : index
    %c0_6 = arith.constant 0 : index
    %4 = vector.load %arg4[%c0_5, %c0_6] : memref<1x256xi32, #tpu.memory_space<vmem>>, vector<1x256xi32>
    %5 = vector.broadcast %3 : vector<8x1xi32> to vector<8x256xi32>
    %6 = vector.broadcast %4 : vector<1x256xi32> to vector<8x256xi32>
    %7 = arith.cmpi eq, %5, %6 : vector<8x256xi32>
    %8 = tpu.iota {dimensions = array<i32: 0>} : vector<8x256xi32>
    %9 = tpu.iota {dimensions = array<i32: 1>} : vector<8x256xi32>
    %c0_7 = arith.constant 0 : index
    %10 = memref.load %arg0[%c0_7] : memref<2xi32, #tpu.memory_space<smem>>
    %11 = vector.broadcast %10 : i32 to vector<8x256xi32>
    %12 = arith.subi %9, %11 : vector<8x256xi32>
    %13 = arith.cmpi ne, %12, %8 : vector<8x256xi32>
    %14 = arith.andi %7, %13 : vector<8x256xi1>
    %cst_8 = arith.constant 0.000000e+00 : f32
    %15 = vector.broadcast %cst_8 : f32 to vector<8x256xf32>
    %16 = arith.subf %15, %2 : vector<8x256xf32>
    %17 = math.exp %16 : vector<8x256xf32>
    %cst_9 = arith.constant 0.000000e+00 : f32
    %18 = vector.broadcast %cst_9 : f32 to vector<8x256xf32>
    %19 = arith.select %14, %17, %18 : vector<8x256xi1>, vector<8x256xf32>
    %20 = math.exp %2 : vector<8x256xf32>
    %cst_10 = arith.constant 0.000000e+00 : f32
    %21 = vector.broadcast %cst_10 : f32 to vector<8x256xf32>
    %22 = arith.select %7, %21, %20 : vector<8x256xi1>, vector<8x256xf32>
    %cst_11 = arith.constant dense<0.000000e+00> : vector<8xf32>
    %23 = vector.multi_reduction <add>, %19, %cst_11 [1] : vector<8x256xf32> to vector<8xf32>
    %24 = vector.shape_cast %23 : vector<8xf32> to vector<8x1xf32>
    %c0_12 = arith.constant 0 : index
    %c0_13 = arith.constant 0 : index
    %25 = vector.load %arg5[%c0_12, %c0_13] : memref<8x1xf32, #tpu.memory_space<vmem>>, vector<8x1xf32>
    tpu.vector_store %arg5[%c0_12, %c0_13], %24 {strides = array<i32>} : memref<8x1xf32, #tpu.memory_space<vmem>>, vector<8x1xf32>,
    %cst_14 = arith.constant dense<0.000000e+00> : vector<8xf32>
    %26 = vector.multi_reduction <add>, %22, %cst_14 [1] : vector<8x256xf32> to vector<8xf32>
    %27 = vector.shape_cast %26 : vector<8xf32> to vector<8x1xf32>
    %c0_15 = arith.constant 0 : index
    %c0_16 = arith.constant 0 : index
    %28 = vector.load %arg6[%c0_15, %c0_16] : memref<8x1xf32, #tpu.memory_space<vmem>>, vector<8x1xf32>
    tpu.vector_store %arg6[%c0_15, %c0_16], %27 {strides = array<i32>} : memref<8x1xf32, #tpu.memory_space<vmem>>, vector<8x1xf32>,
    return
  }
}

</mosaic_0001>

<bundles_post_ra>
// kernel: tpu_custom_call.1
= control target key start
LH: loop header
LB: loop body
LE: loop exit
PB: predicated region body
PF: predicated region fallthrough
CT: control target
= control target key end

     0   :  { %12 = vsyncpa [#allocation4], 0  ;;  %s303_s0 = inlined_call_operand.vmem [shape: s32[2], index: 0, kind: input, shape index: {}]   ;;  %s304_s1 = inlined_call_operand.vmem [shape: bf16[8,32], index: 1, kind: input, shape index: {}]   ;;  %s305_s2 = inlined_call_operand.hbm [shape: bf16[32,256], index: 2, kind: input, shape index: {}]   ;;  %s306_s3 = inlined_call_operand.vmem [shape: s32[8,1], index: 3, kind: input, shape index: {}]   ;;  %s307_s4 = inlined_call_operand.vmem [shape: s32[1,256], index: 4, kind: input, shape index: {}]   ;;  %s308_s5 = inlined_call_operand.vmem [shape: f32[8,1], index: 5, kind: output, shape index: {0}]   ;;  %s309_s6 = inlined_call_operand.vmem [shape: f32[8,1], index: 6, kind: output, shape index: {1}]  }
   0x1   :  { %s20_s23 = sshll.u32 %s303_s0, 4  ;;  %s21_s23 = int_to_ptr.vmem [resolvable:$true] %s20_s23 }
   0x2   :  { %13 = vsyncpa [#allocation3], 0  ;;  %s206_s24 = scalar_lea.vmem %s21_s23, 16  ;;  %p211_p1 = scmp.lt.s32.totalorder %s21_s23, %s21_s23 }
   0x3   :  { %p207_p0 = scmp.ne.s32.totalorder %s21_s23, %s206_s24  ;;  %p212_p2 = scmp.lt.s32.totalorder %s206_s24, %s206_s24 }
   0x5   :  { %p213_p3 = por %p212_p2, %p211_p1 }
   0x7   :  { %p214_p4 = pnand %p213_p3, %p207_p0 }
   0x9   :  { %217 = shalt.err (!%p214_p4)
}
   0xa   :  { %s242_s25 = smov [#allocation2]   ;;  %s243_s26 = smov [#allocation5]  }
   0xb   :  { %23 = dma.vmem_to_smem %s21_s23, 16, %s242_s25, [#allocation4]  }
   0xc   :  { %s31_s27 = sshll.u32 %s243_s26, 4  ;;  %s32_s27 = int_to_ptr.vmem [resolvable:$true] %s31_s27 }
   0xd   :  { %s226_s28 = scalar_lea.vmem %s32_s27, 512  ;;  %p231_p6 = scmp.lt.s32.totalorder %s32_s27, %s32_s27 }
   0xe   :  { %p227_p5 = scmp.ne.s32.totalorder %s32_s27, %s226_s28  ;;  %p232_p7 = scmp.lt.s32.totalorder %s226_s28, %s226_s28 }
  0x10   :  { %p233_p8 = por %p232_p7, %p231_p6 }
  0x12   :  { %p234_p9 = pnand %p233_p8, %p227_p5 }
  0x14   :  { %237 = shalt.err (!%p234_p9)
}
  0x15   :  { %s244_s0 = smov 128   ;;  %s245_s29 = smov 8  }
  0x16   :  { %37 = dma.hbm_to_vmem [thread:$0]  %s305_s2, 512, %s32_s27, [#allocation3], %s244_s0, %s244_s0, %s245_s29  }
  0x17   :  { %238 = dma.done.wait [#allocation4], 16  }
  0x18   :  { %239 = vsyncadd [#allocation4], 4294967280 }
  0x19   :  { %240 = dma.done.wait [#allocation3], 512  }
  0x1a   :  { %241 = vsyncadd [#allocation3], 4294966784 }
  0x1b   :  { %48 = sfence }
  0x1c   :  { %v192_v0 = vld [vmem:[#allocation5 + $0x14] ss:$8 sps:$4 sm:$0xff]   ;;  %v194_v1 = vld [vmem:[#allocation5 + $0x10] ss:$8 sps:$4 sm:$0xff]   ;;  %v246_v2 = vmov 0   ;;  %v120_v5 = vld [vmem:[%s306_s3] sm:$0xff]  ;;  %v125_v7 = vlaneseq }
  0x1d   :  { %111 = vmatprep.mubr.bf16.mxu0 %v246_v2  ;;  %191 = vset.pattern.permute.xlu0 %v246_v2  ;;  %v195_v3 = vld [vmem:[#allocation5 + $0x4] ss:$8 sps:$4 sm:$0xff]   ;;  %v197_v4 = vld [vmem:[#allocation5] ss:$8 sps:$4 sm:$0xff]   ;;  %vm75_vm0 = vcmask 261120   ;;  %s140_s11 = sld [smem:[#allocation2]] }
  0x1e   :  { %91 = vmatprep.subr.bf16.mxu0 %v192_v0  ;;  %123 = vperm.xlu0 %191, %v120_v5   ;;  %v50_v6 = vld [vmem:[%s304_s1] sm:$0xf]  ;;  %v126_v12 = vshrl.u32 %v125_v7, 7  ;;  %v138_v16 = vand.u32 127, %v125_v7  ;;  %vm165_vm7 = vcmask 7168  }
  0x1f   :  { %92 = vmatpush1.bf16.msra.mxu0 %v194_v1  ;;  %v121_v21 = vld [vmem:[%s307_s4] sm:$0x3] }
  0x20   :  { %93 = vmatprep.subr.bf16.mxu0 %v195_v3  ;;  %v127_v20 = vsub.s32 0, %v126_v12  ;;  %v131_v22 = vsub.s32 1, %v126_v12  ;;  %v139_v23 = vadd.s32 128, %v138_v16 }
  0x22   :  { %v128_v25 = vrot.slane %v121_v21, %v127_v20  ;;  %v132_v27 = vrot.slane %v121_v21, %v131_v22 }
  0x23   :  { %94 = vmatpush1.bf16.msra.mxu0 %v197_v4  ;;  %v141_v24 = vstv %s140_s11 }
  0x24   :  { %v142_v26 = vsub.s32 %v138_v16, %v141_v24  ;;  %v143_v28 = vsub.s32 %v139_v23, %v141_v24 }
  0x26   :  { %185 = vmatmul.mubr.msk.bf16.vlgmr.msra.gmra.mxu0 %vm75_vm0, %v50_v6  ;;  %vm144_vm1 = vcmp.ne.s32.totalorder %v142_v26, %v126_v12  ;;  %vm145_vm3 = vcmp.ne.s32.totalorder %v143_v28, %v126_v12 }
  0x99   :  { %v124_v29 = vpop.permute.xlu0 %123 }
  0x9a   :  { %vm133_vm2 = vcmp.eq.s32.totalorder %v124_v29, %v128_v25  ;;  %vm134_vm4 = vcmp.eq.s32.totalorder %v124_v29, %v132_v27 }
  0x9b   :  { %vm146_vm5 = vmand %vm133_vm2, %vm144_vm1 }
  0x9c   :  { %vm147_vm6 = vmand %vm134_vm4, %vm145_vm3 }
  0xe6   :  { %v113_v8 = vpop.f32.mrf.mxu0 }
  0xe7   :  { %v148_v9 = vsub.f32 0.0, %v113_v8  ;;  %v156_v10 = vmul.f32 1.442695, %v113_v8 }
  0xe8   :  { %v115_v11 = vpop.f32.mrf.mxu0 }
  0xe9   :  { %v150_v13 = vmul.f32 1.442695, %v148_v9  ;;  %v149_v14 = vsub.f32 0.0, %v115_v11  ;;  %v158_v15 = vmul.f32 1.442695, %v115_v11  ;;  %198 = vpow2.f32 %v156_v10 }
  0xea   :  { %v117_v17 = vpop.f32.mrf.mxu0 }
  0xeb   :  { %200 = vpow2.f32 %v150_v13  ;;  %v152_v18 = vmul.f32 1.442695, %v149_v14 }
  0xec   :  { %202 = vpow2.f32 %v158_v15  ;;  %v118_v19 = vpop.f32.mrf.mxu0 }
  0xed   :  { %204 = vpow2.f32 %v152_v18 }
  0xf6   :  { %v199_v30 = vpop.eup %198 }
  0xf7   :  { %v160_v34 = vsel %vm133_vm2, 0.0, %v199_v30 }
  0xf8   :  { %v201_v31 = vpop.eup %200 }
  0xf9   :  { %v203_v32 = vpop.eup %202  ;;  %v154_v37 = vsel %vm146_vm5, %v201_v31, 0.0 }
  0xfa   :  { %v205_v33 = vpop.eup %204  ;;  %v161_v35 = vsel %vm134_vm4, 0.0, %v203_v32 }
  0xfb   :  { %v167_v36 = vadd.f32 %v161_v35, %v160_v34  ;;  %v155_v38 = vsel %vm147_vm6, %v205_v33, 0.0 }
  0xfc   :  { %v162_v39 = vadd.f32 %v155_v38, %v154_v37 }
  0xfd   :  { %168 = vadd.xlane.f32.xlu1 %v167_v36 }
  0xfe   :  { %163 = vadd.xlane.f32.xlu0 %v162_v39 }
 0x186   :  { %v169_v40 = vpop.xlane.xlu1 %168 }
 0x187   :  { %170 = vst.msk [vmem:[%s309_s6] sm:$0xff] %vm165_vm7, %v169_v40  ;;  %v164_v41 = vpop.xlane.xlu0 %163 }
 0x188   :  { %166 = vst.msk [vmem:[%s308_s5] sm:$0xff] %vm165_vm7, %v164_v41 }
 0x189   :  { %179 = vsyncpa [#allocation3], 1 }
 0x18a   :  { %180 = vsyncpa [#allocation4], 1 }

</bundles_post_ra>
